<compile_context>
chip_gen: v7x
topology: tpu7x:2x2x1
jax: 0.10.0
libtpu: 0.0.40
codegen_flags: <defaults>
</compile_context>

<pallas_src>
import functools

import jax
import jax.numpy as jnp
from jax.experimental import pallas as pl
from jax.experimental.pallas import tpu as pltpu

_LANE = 128


def _cosine_loss_kernel(xc_ref, xs_ref, t_ref, sim_ref, out_ref, *,
                        dc, tb, batch, inner_tiles, n_blocks):
    c = pl.program_id(0)          # parallel (core) axis
    i = pl.program_id(1)          # sequential row-tile axis (reduction)

    @pl.when(i == 0)
    def _():
        out_ref[...] = jnp.zeros_like(out_ref)

    # Load raw-dtype tiles, widen in-register (free in the VALU slot on v6e/v7x,
    # required on v5e which has no bf16 VPU path).
    xc = xc_ref[...].astype(jnp.float32)              # (TB, Dc)  phoc part
    xs = xs_ref[...].astype(jnp.float32)              # (TB, Ds)  phos part
    # Slice the target *ref* with static slices before widening: any relayout copy for
    # a lane-misaligned dc is done at the narrow input dtype; HBM copy of the target is
    # never duplicated (no concat anywhere).
    tc = t_ref[:, :dc].astype(jnp.float32)            # (TB, Dc)
    ts = t_ref[:, dc:].astype(jnp.float32)            # (TB, Ds)

    dot = (jnp.sum(xc * tc, axis=-1, keepdims=True)
           + jnp.sum(xs * ts, axis=-1, keepdims=True))            # (TB, 1)
    sx2 = (jnp.sum(xc * xc, axis=-1, keepdims=True)
           + jnp.sum(xs * xs, axis=-1, keepdims=True))            # (TB, 1)
    st2 = (jnp.sum(tc * tc, axis=-1, keepdims=True)
           + jnp.sum(ts * ts, axis=-1, keepdims=True))            # (TB, 1)

    # torch clamps each norm to 1e-8 -> clamp each squared norm to 1e-16 and use one
    # rsqrt (EUP) per norm instead of sqrt + sqrt + divide.
    eps2 = 1e-16
    cos = (dot
           * jax.lax.rsqrt(jnp.maximum(sx2, eps2))
           * jax.lax.rsqrt(jnp.maximum(st2, eps2)))               # (TB, 1)

    sim = sim_ref[...].astype(jnp.float32)                        # (TB, 1), +1 / -1
    # CosineEmbeddingLoss, margin=0: sim==+1 -> 1-cos ; sim==-1 -> max(0, cos)
    per = jnp.where(sim > 0, 1.0 - cos, jnp.maximum(cos, 0.0))    # (TB, 1)

    if batch % tb != 0:
        # Only the single (globally last) partial edge tile needs row masking.
        blk = c * inner_tiles + i
        last = n_blocks - 1

        @pl.when(blk == last)
        def _():
            row = last * tb + jax.lax.broadcasted_iota(jnp.int32, (tb, 1), 0)
            out_ref[...] += jnp.sum(jnp.where(row < batch, per, 0.0),
                                    axis=0, keepdims=True)

        @pl.when(blk != last)
        def _():
            out_ref[...] += jnp.sum(per, axis=0, keepdims=True)
    else:
        out_ref[...] += jnp.sum(per, axis=0, keepdims=True)       # (8,1) += (1,1) bcast


def _min_sublane(*arrays):
    # f32 -> 8 rows, bf16/f16 -> 16, int8/fp8 -> 32.
    s = 8
    for a in arrays:
        itemsize = jnp.dtype(a.dtype).itemsize
        if itemsize < 4:
            s = max(s, 8 * (4 // itemsize))
    return s


def _device_kind():
    try:
        return jax.devices()[0].device_kind.lower()
    except Exception:
        return ""


def cosine_loss(phoc, phos, phosc_target, sim, *,
                block_b=None, n_cores=None, vmem_input_budget=24 << 20):
    """Pallas equivalent of CosineLoss.forward. Returns scalar float32 loss.

    phoc: (B, Dc), phos: (B, Ds), phosc_target: (B, Dc+Ds), sim: (B,) in {+1,-1}.
    Inputs may be fp32 or narrower (bf16/int8); they are widened to f32 in-kernel.
    """
    b, dc = phoc.shape
    ds = phos.shape[1]
    d = dc + ds
    assert phosc_target.shape == (b, d)

    kind = _device_kind()
    is_v7 = ("v7" in kind) or ("tpu7" in kind)
    if block_b is None:
        block_b = 1024 if is_v7 else 512          # faster HBM on v7x -> fewer grid steps
    if n_cores is None:
        n_cores = 2 if is_v7 else 1               # only v7x has 2 TensorCores per chip

    sim2 = sim.reshape(b, 1)
    sub = _min_sublane(phoc, phos, phosc_target, sim2)

    # VMEM-budgeted row tile: 2 pipeline buffers per input; sim pads to 128 lanes in VMEM.
    row_bytes = 2 * (dc * phoc.dtype.itemsize
                     + ds * phos.dtype.itemsize
                     + d * phosc_target.dtype.itemsize
                     + _LANE * sim2.dtype.itemsize)
    tb_budget = max(sub, (vmem_input_budget // row_bytes) // sub * sub)
    tb = min(block_b, b, tb_budget)
    if tb < b and tb % sub:
        tb = max(sub, (tb // sub) * sub)
    n_blocks = pl.cdiv(b, tb)

    # Use the 2nd core only if every grid point maps to a distinct, valid block
    # (clamped duplicate tiles on an HBM-bound kernel are pure wasted bandwidth).
    if n_cores > 1 and n_blocks >= 2:
        if n_blocks % n_cores:
            alt_blocks = pl.cdiv(n_blocks, n_cores) * n_cores
            alt_tb = max(sub, pl.cdiv(pl.cdiv(b, alt_blocks), sub) * sub)
            if pl.cdiv(b, alt_tb) % n_cores == 0:
                tb = alt_tb
                n_blocks = pl.cdiv(b, tb)
        if n_blocks % n_cores:
            n_cores = 1
    else:
        n_cores = 1
    inner_tiles = n_blocks // n_cores

    # Explicit scoped-VMEM limit: the 16 MiB (v5e) / 32 MiB (v6e/v7x) defaults are easily
    # exceeded for fp32 + wide PHOSC targets; cap well under v7x's 64 MiB physical VMEM.
    in_bytes = tb * row_bytes                     # already includes the 2x pipeline buffers
    vmem_limit = int(min(max(in_bytes + (8 << 20), 16 << 20), 48 << 20))

    kernel = functools.partial(_cosine_loss_kernel, dc=dc, tb=tb, batch=b,
                               inner_tiles=inner_tiles, n_blocks=n_blocks)

    def blk_map(c, i):
        return (c * inner_tiles + i, 0)           # every grid point is a valid block

    partials = pl.pallas_call(
        kernel,
        out_shape=jax.ShapeDtypeStruct((n_cores * 8, 1), jnp.float32),
        grid=(n_cores, inner_tiles),
        in_specs=[
            pl.BlockSpec((tb, dc), blk_map),      # phoc   (raw dtype)
            pl.BlockSpec((tb, ds), blk_map),      # phos   (raw dtype)
            pl.BlockSpec((tb, d), blk_map),       # target (raw dtype, never concatenated)
            pl.BlockSpec((tb, 1), blk_map),       # sim
        ],
        out_specs=pl.BlockSpec((8, 1), lambda c, i: (c, 0)),   # resident per-core accumulator
        compiler_params=pltpu.CompilerParams(
            dimension_semantics=("parallel", "arbitrary"),
            vmem_limit_bytes=vmem_limit),
    )(phoc, phos, phosc_target, sim2)

    # All 8 sublane rows of each per-core block hold the same partial sum (broadcast
    # accumulation): sum everything and divide by 8 -> robust to future layout edits.
    return jnp.sum(partials) * (100.0 / (8.0 * b))


def _reference(phoc, phos, phosc_target, sim):
    # Mirrors torch: F.cosine_embedding_loss with per-norm eps clamp (eps=1e-8), mean, *100.
    x = jnp.concatenate([phoc, phos], axis=1).astype(jnp.float32)
    t = phosc_target.astype(jnp.float32)
    eps = 1e-8
    nx = jnp.maximum(jnp.linalg.norm(x, axis=-1), eps)
    nt = jnp.maximum(jnp.linalg.norm(t, axis=-1), eps)
    cos = jnp.sum(x * t, axis=-1) / (nx * nt)
    per = jnp.where(sim > 0, 1.0 - cos, jnp.maximum(cos, 0.0))
    return jnp.mean(per) * 100.0


if __name__ == "__main__":
    key = jax.random.PRNGKey(0)
    k1, k2, k3, k4 = jax.random.split(key, 4)

    B = 8
    D_PHOC = 24
    D_PHOS = 8

    phoc = jax.random.normal(k1, (B, D_PHOC), dtype=jnp.float32)
    phos = jax.random.normal(k2, (B, D_PHOS), dtype=jnp.float32)
    phosc_target = jax.random.normal(k3, (B, D_PHOC + D_PHOS), dtype=jnp.float32)
    sim = jnp.where(jax.random.bernoulli(k4, 0.5, (B,)), 1.0, -1.0).astype(jnp.float32)

    loss = jax.block_until_ready(cosine_loss(phoc, phos, phosc_target, sim))
    ref = _reference(phoc, phos, phosc_target, sim)
    assert jnp.allclose(loss, ref, rtol=1e-4, atol=1e-4), (loss, ref)
    print("KERNEL_OK")
</pallas_src>

<mosaic_0001>
module attributes {stable_mosaic.version = 11 : i64} {
  func.func @_cosine_loss_kernel(%arg0: i32, %arg1: i32, %arg2: memref<8x24xf32, #tpu.memory_space<vmem>>, %arg3: memref<8x8xf32, #tpu.memory_space<vmem>>, %arg4: memref<8x32xf32, #tpu.memory_space<vmem>>, %arg5: memref<8x1xf32, #tpu.memory_space<vmem>>, %arg6: memref<8x1xf32, #tpu.memory_space<vmem>>) attributes {dimension_semantics = [#tpu.dimension_semantics<parallel>, #tpu.dimension_semantics<arbitrary>], iteration_bounds = array<i64: 1, 1>, scalar_prefetch = 0 : i64, scratch_operands = 0 : i64, tpu.core_type = #tpu.core_type<tc>, window_params = [{transform_indices = @transform_0, window_bounds = array<i64: 8, 24>}, {transform_indices = @transform_1, window_bounds = array<i64: 8, 8>}, {transform_indices = @transform_2, window_bounds = array<i64: 8, 32>}, {transform_indices = @transform_3, window_bounds = array<i64: 8, 1>}, {transform_indices = @transform_4, window_bounds = array<i64: 8, 1>}]} {
    %c0_i32 = arith.constant 0 : i32
    %0 = arith.cmpi eq, %arg1, %c0_i32 : i32
    %1 = arith.extui %0 : i1 to i32
    %c0_i32_0 = arith.constant 0 : i32
    %2 = arith.cmpi ne, %1, %c0_i32_0 : i32
    scf.if %2 {
      %cst_24 = arith.constant 0.000000e+00 : f32
      %50 = vector.broadcast %cst_24 : f32 to vector<8x1xf32>
      %c0_25 = arith.constant 0 : index
      %c0_26 = arith.constant 0 : index
      %51 = vector.load %arg6[%c0_25, %c0_26] : memref<8x1xf32, #tpu.memory_space<vmem>>, vector<8x1xf32>
      tpu.vector_store %arg6[%c0_25, %c0_26], %50 {strides = array<i32>} : memref<8x1xf32, #tpu.memory_space<vmem>>, vector<8x1xf32>,
    } else {
    }
    %c0 = arith.constant 0 : index
    %c0_1 = arith.constant 0 : index
    %3 = vector.load %arg2[%c0, %c0_1] : memref<8x24xf32, #tpu.memory_space<vmem>>, vector<8x24xf32>
    %c0_2 = arith.constant 0 : index
    %c0_3 = arith.constant 0 : index
    %4 = vector.load %arg3[%c0_2, %c0_3] : memref<8x8xf32, #tpu.memory_space<vmem>>, vector<8x8xf32>
    %c0_4 = arith.constant 0 : index
    %c0_5 = arith.constant 0 : index
    %5 = vector.load %arg4[%c0_4, %c0_5] : memref<8x32xf32, #tpu.memory_space<vmem>>, vector<8x24xf32>
    %c0_6 = arith.constant 0 : index
    %c24 = arith.constant 24 : index
    %6 = vector.load %arg4[%c0_6, %c24] : memref<8x32xf32, #tpu.memory_space<vmem>>, vector<8x8xf32>
    %7 = arith.mulf %3, %5 : vector<8x24xf32>
    %cst = arith.constant dense<0.000000e+00> : vector<8xf32>
    %8 = vector.multi_reduction <add>, %7, %cst [1] : vector<8x24xf32> to vector<8xf32>
    %9 = vector.shape_cast %8 : vector<8xf32> to vector<8x1xf32>
    %10 = arith.mulf %4, %6 : vector<8x8xf32>
    %cst_7 = arith.constant dense<0.000000e+00> : vector<8xf32>
    %11 = vector.multi_reduction <add>, %10, %cst_7 [1] : vector<8x8xf32> to vector<8xf32>
    %12 = vector.shape_cast %11 : vector<8xf32> to vector<8x1xf32>
    %13 = arith.addf %9, %12 : vector<8x1xf32>
    %14 = arith.mulf %3, %3 : vector<8x24xf32>
    %cst_8 = arith.constant dense<0.000000e+00> : vector<8xf32>
    %15 = vector.multi_reduction <add>, %14, %cst_8 [1] : vector<8x24xf32> to vector<8xf32>
    %16 = vector.shape_cast %15 : vector<8xf32> to vector<8x1xf32>
    %17 = arith.mulf %4, %4 : vector<8x8xf32>
    %cst_9 = arith.constant dense<0.000000e+00> : vector<8xf32>
    %18 = vector.multi_reduction <add>, %17, %cst_9 [1] : vector<8x8xf32> to vector<8xf32>
    %19 = vector.shape_cast %18 : vector<8xf32> to vector<8x1xf32>
    %20 = arith.addf %16, %19 : vector<8x1xf32>
    %21 = arith.mulf %5, %5 : vector<8x24xf32>
    %cst_10 = arith.constant dense<0.000000e+00> : vector<8xf32>
    %22 = vector.multi_reduction <add>, %21, %cst_10 [1] : vector<8x24xf32> to vector<8xf32>
    %23 = vector.shape_cast %22 : vector<8xf32> to vector<8x1xf32>
    %24 = arith.mulf %6, %6 : vector<8x8xf32>
    %cst_11 = arith.constant dense<0.000000e+00> : vector<8xf32>
    %25 = vector.multi_reduction <add>, %24, %cst_11 [1] : vector<8x8xf32> to vector<8xf32>
    %26 = vector.shape_cast %25 : vector<8xf32> to vector<8x1xf32>
    %27 = arith.addf %23, %26 : vector<8x1xf32>
    %cst_12 = arith.constant 1.000000e-16 : f32
    %28 = vector.broadcast %cst_12 : f32 to vector<8x1xf32>
    %29 = arith.maximumf %20, %28 : vector<8x1xf32>
    %30 = math.rsqrt %29 : vector<8x1xf32>
    %31 = arith.mulf %13, %30 : vector<8x1xf32>
    %cst_13 = arith.constant 1.000000e-16 : f32
    %32 = vector.broadcast %cst_13 : f32 to vector<8x1xf32>
    %33 = arith.maximumf %27, %32 : vector<8x1xf32>
    %34 = math.rsqrt %33 : vector<8x1xf32>
    %35 = arith.mulf %31, %34 : vector<8x1xf32>
    %c0_14 = arith.constant 0 : index
    %c0_15 = arith.constant 0 : index
    %36 = vector.load %arg5[%c0_14, %c0_15] : memref<8x1xf32, #tpu.memory_space<vmem>>, vector<8x1xf32>
    %cst_16 = arith.constant 0.000000e+00 : f32
    %37 = vector.broadcast %cst_16 : f32 to vector<8x1xf32>
    %38 = arith.cmpf ogt, %36, %37 : vector<8x1xf32>
    %cst_17 = arith.constant 1.000000e+00 : f32
    %39 = vector.broadcast %cst_17 : f32 to vector<8x1xf32>
    %40 = arith.subf %39, %35 : vector<8x1xf32>
    %cst_18 = arith.constant 0.000000e+00 : f32
    %41 = vector.broadcast %cst_18 : f32 to vector<8x1xf32>
    %42 = arith.maximumf %35, %41 : vector<8x1xf32>
    %43 = arith.select %38, %40, %42 : vector<8x1xi1>, vector<8x1xf32>
    %c0_19 = arith.constant 0 : index
    %c0_20 = arith.constant 0 : index
    %44 = vector.load %arg6[%c0_19, %c0_20] : memref<8x1xf32, #tpu.memory_space<vmem>>, vector<8x1xf32>
    %cst_21 = arith.constant dense<0.000000e+00> : vector<1xf32>
    %45 = vector.multi_reduction <add>, %43, %cst_21 [0] : vector<8x1xf32> to vector<1xf32>
    %46 = vector.shape_cast %45 : vector<1xf32> to vector<1x1xf32>
    %47 = vector.broadcast %46 : vector<1x1xf32> to vector<8x1xf32>
    %48 = arith.addf %44, %47 : vector<8x1xf32>
    %c0_22 = arith.constant 0 : index
    %c0_23 = arith.constant 0 : index
    %49 = vector.load %arg6[%c0_22, %c0_23] : memref<8x1xf32, #tpu.memory_space<vmem>>, vector<8x1xf32>
    tpu.vector_store %arg6[%c0_22, %c0_23], %48 {strides = array<i32>} : memref<8x1xf32, #tpu.memory_space<vmem>>, vector<8x1xf32>,
    return
  }
  func.func @transform_0(%arg0: i32, %arg1: i32) -> (i32, i32) {
    %c1_i32 = arith.constant 1 : i32
    %0 = arith.muli %arg0, %c1_i32 : i32
    %1 = arith.addi %0, %arg1 : i32
    %c0_i32 = arith.constant 0 : i32
    %c0_i32_0 = arith.constant 0 : i32
    return %1, %c0_i32 : i32, i32
  }
  func.func @transform_1(%arg0: i32, %arg1: i32) -> (i32, i32) {
    %c1_i32 = arith.constant 1 : i32
    %0 = arith.muli %arg0, %c1_i32 : i32
    %1 = arith.addi %0, %arg1 : i32
    %c0_i32 = arith.constant 0 : i32
    %c0_i32_0 = arith.constant 0 : i32
    return %1, %c0_i32 : i32, i32
  }
  func.func @transform_2(%arg0: i32, %arg1: i32) -> (i32, i32) {
    %c1_i32 = arith.constant 1 : i32
    %0 = arith.muli %arg0, %c1_i32 : i32
    %1 = arith.addi %0, %arg1 : i32
    %c0_i32 = arith.constant 0 : i32
    %c0_i32_0 = arith.constant 0 : i32
    return %1, %c0_i32 : i32, i32
  }
  func.func @transform_3(%arg0: i32, %arg1: i32) -> (i32, i32) {
    %c1_i32 = arith.constant 1 : i32
    %0 = arith.muli %arg0, %c1_i32 : i32
    %1 = arith.addi %0, %arg1 : i32
    %c0_i32 = arith.constant 0 : i32
    %c0_i32_0 = arith.constant 0 : i32
    return %1, %c0_i32 : i32, i32
  }
  func.func @transform_4(%arg0: i32, %arg1: i32) -> (i32, i32) {
    %c0_i32 = arith.constant 0 : i32
    %c0_i32_0 = arith.constant 0 : i32
    return %arg0, %c0_i32 : i32, i32
  }
}

</mosaic_0001>

<bundles_post_ra>
// kernel: tpu_custom_call.1
= control target key start
LH: loop header
LB: loop body
LE: loop exit
PB: predicated region body
PF: predicated region fallthrough
CT: control target
= control target key end

     0   :  { %9 = vsyncpa [#allocation3], 0  ;;  %s205_s15 = smov [#allocation2]   ;;  %s269_s0 = inlined_call_operand.vmem [shape: f32[8,24], index: 0, kind: input, shape index: {}]   ;;  %s270_s1 = inlined_call_operand.hbm [shape: f32[8,8], index: 1, kind: input, shape index: {}]   ;;  %s271_s2 = inlined_call_operand.vmem [shape: f32[8,32], index: 2, kind: input, shape index: {}]   ;;  %s272_s3 = inlined_call_operand.vmem [shape: f32[8,1], index: 3, kind: input, shape index: {}]   ;;  %s273_s4 = inlined_call_operand.vmem [shape: f32[8,1], index: 4, kind: output, shape index: {}]  }
   0x1   :  { %s27_s16 = sshll.u32 %s205_s15, 4  ;;  %s181_s19 = scalar_lea.hbm %s270_s1, 128  ;;  %s28_s16 = int_to_ptr.vmem [resolvable:$true] %s27_s16 }
   0x2   :  { %p182_p0 = scmp.ne.s32.totalorder %s270_s1, %s181_s19  ;;  %p185_p1 = scmp.lt.u32.totalorder %s181_s19, %s270_s1 }
   0x4   :  { %p187_p2 = pnand %p185_p1, %p182_p0 }
   0x6   :  { %190 = shalt.err (!%p187_p2)
}
   0x7   :  { %s191_s24 = scalar_lea.vmem %s28_s16, 128  ;;  %p196_p4 = scmp.lt.s32.totalorder %s28_s16, %s28_s16 }
   0x8   :  { %p192_p3 = scmp.ne.s32.totalorder %s28_s16, %s191_s24  ;;  %p197_p5 = scmp.lt.s32.totalorder %s191_s24, %s191_s24 }
   0xa   :  { %p198_p6 = por %p197_p5, %p196_p4 }
   0xc   :  { %p199_p7 = pnand %p198_p6, %p192_p3 }
   0xe   :  { %202 = shalt.err (!%p199_p7)
}
   0xf   :  { %30 = dma.hbm_to_vmem [thread:$0]  %s270_s1, 128, %s28_s16, [#allocation3]  }
  0x10   :  { %203 = dma.done.wait [#allocation3], 128  }
  0x11   :  { %204 = vsyncadd [#allocation3], 4294967168  ;;  %vm88_vm0 = vcmask 7168   ;;  %v206_v0 = vmov 0.0   ;;  %v92_v1 = vld [vmem:[%s271_s2] sm:$0xff]  ;;  %vm94_vm1 = vcmask 195584  }
  0x12   :  { %89 = vst.msk [vmem:[%s273_s4] sm:$0xff] %vm88_vm0, %v206_v0  ;;  %v90_v2 = vld [vmem:[%s269_s0] sm:$0xff]  ;;  %v117_v4 = vmul.f32 %v92_v1, %v92_v1  ;;  %vm103_vm2 = vcmask 64512   ;;  %s207_s1 = smov 104  }
  0x13   :  { %v91_v3 = vld [vmem:[#allocation2] sm:$0xff]  ;;  %v108_v5 = vmul.f32 %v90_v2, %v90_v2  ;;  %v93_v7 = vmul.f32 %v92_v1, %v90_v2 }
  0x14   :  { %v112_v6 = vmul.f32 %v91_v3, %v91_v3  ;;  %122 = vrot.lane.b32.xlu0 %v117_v4, %s207_s1  ;;  %v118_v11 = vsel %vm94_vm1, %v117_v4, 0.0  ;;  %v135_v29 = vld [vmem:[%s272_s3] sm:$0xff] }
  0x15   :  { %v109_v8 = vsel %vm94_vm1, %v108_v5, 0.0  ;;  %v95_v9 = vsel %vm94_vm1, %v93_v7, 0.0  ;;  %vm136_vm3 = vcmp.gt.f32.partialorder %v135_v29, 0.0 }
  0x16   :  { %110 = vadd.xlane.f32.xlu1 %v109_v8  ;;  %v113_v10 = vsel %vm103_vm2, %v112_v6, 0.0 }
  0x18   :  { %99 = vrot.lane.b32.xlu0 %v92_v1, %s207_s1 }
  0x19   :  { %v140_v42 = vld [vmem:[%s273_s4] sm:$0xff] }
  0x1a   :  { %114 = vadd.xlane.f32.xlu1 %v113_v10 }
  0x37   :  { %119 = vadd.xlane.f32.xlu0 %v118_v11 }
  0x86   :  { %v123_v12 = vpop.permute.xlu0 %122 }
  0x87   :  { %v125_v13 = vsel %vm103_vm2, %v123_v12, 0.0 }
  0x88   :  { %126 = vadd.xlane.f32.xlu1 %v125_v13 }
  0x8a   :  { %v100_v14 = vpop.permute.xlu0 %99 }
  0x8b   :  { %v102_v15 = vmul.f32 %v100_v14, %v91_v3 }
  0x8c   :  { %96 = vadd.xlane.f32.xlu1 %v95_v9 }
  0x8d   :  { %v104_v16 = vsel %vm103_vm2, %v102_v15, 0.0 }
  0x90   :  { %105 = vadd.xlane.f32.xlu1 %v104_v16 }
  0xa3   :  { %v111_v17 = vpop.xlane.xlu1 %110 }
  0xa7   :  { %v115_v18 = vpop.xlane.xlu1 %114 }
  0xa8   :  { %v116_v19 = vadd.f32 %v115_v18, %v111_v17 }
  0xaa   :  { %v129_v21 = vmax.f32 %v116_v19, 1e-16 }
  0xac   :  { %177 = vrsqrt.f32 %v129_v21 }
  0xb6   :  { %v178_v28 = vpop.eup %177 }
  0xc4   :  { %v120_v20 = vpop.xlane.xlu0 %119 }
 0x115   :  { %v127_v22 = vpop.xlane.xlu1 %126 }
 0x116   :  { %v128_v23 = vadd.f32 %v127_v22, %v120_v20 }
 0x118   :  { %v132_v24 = vmax.f32 %v128_v23, 1e-16 }
 0x119   :  { %v97_v25 = vpop.xlane.xlu1 %96 }
 0x11a   :  { %179 = vrsqrt.f32 %v132_v24 }
 0x11d   :  { %v106_v26 = vpop.xlane.xlu1 %105 }
 0x11e   :  { %v107_v27 = vadd.f32 %v106_v26, %v97_v25 }
 0x120   :  { %v131_v30 = vmul.f32 %v178_v28, %v107_v27 }
 0x124   :  { %v180_v31 = vpop.eup %179 }
 0x125   :  { %v134_v32 = vmul.f32 %v180_v31, %v131_v30 }
 0x127   :  { %v137_v33 = vsub.f32 1.0, %v134_v32  ;;  %v138_v34 = vmax.f32 %v134_v32, 0.0 }
 0x129   :  { %v139_v35 = vsel %vm136_vm3, %v137_v33, %v138_v34 }
 0x12a   :  { %v142_v36 = vsel %vm88_vm0, %v139_v35, 0.0 }
 0x12b   :  { %v143_v37 = vrot.slane %v142_v36, 4 }
 0x12d   :  { %v144_v38 = vadd.f32 %v143_v37, %v142_v36 }
 0x12f   :  { %v145_v39 = vrot.slane %v144_v38, 2 }
 0x131   :  { %v146_v40 = vadd.f32 %v145_v39, %v144_v38 }
 0x133   :  { %v147_v41 = vrot.slane %v146_v40, 1 }
 0x135   :  { %v148_v43 = vadd.f32 %v147_v41, %v146_v40 }
 0x137   :  { %v149_v44 = vadd.f32 %v148_v43, %v140_v42 }
 0x139   :  { %150 = vst.msk [vmem:[%s273_s4] sm:$0xff] %vm88_vm0, %v149_v44 }
 0x13a   :  { %155 = vsyncpa [#allocation3], 1 }

</bundles_post_ra>
